<compile_context>
chip_gen: v5e
topology: v5e:2x2
jax: 0.10.0
libtpu: 0.0.40
codegen_flags: <defaults>
</compile_context>

<pallas_src>
import jax
import jax.numpy as jnp
from jax.experimental import pallas as pl
from jax.experimental.pallas import tpu as pltpu

_TARGET_TILE_BYTES = 4 << 20   # ~4 MiB live per tile (per buffer)
_SMALL_SLAB_BYTES = 2 << 20    # per-batch slab threshold for the batch-blocked path


def _transpose2d_kernel(x_ref, o_ref):
    # x_ref: (ts, th) VMEM tile -> o_ref: (th, ts) VMEM tile (2-D XLU transpose).
    o_ref[...] = x_ref[...].T


def _transpose_batched_kernel(x_ref, o_ref):
    # x_ref: (tb, S, H) VMEM tile -> o_ref: (tb, H, S) VMEM tile.
    o_ref[...] = jnp.transpose(x_ref[...], (0, 2, 1))


def _pick_tile(dim: int, itemsize: int) -> int:
    # Full extent is always a legal block dim (bypasses the (8,128) rule);
    # otherwise use a dtype-scaled multiple of 128 so both the input rows (th
    # contiguous elems) and the transposed output rows (ts contiguous elems)
    # stay lane-dense with >= ~2 KiB DMA bursts:
    #   f32 -> 1024 (4 KiB), bf16 -> 1024 (2 KiB), int8 -> 2048 (2 KiB).
    max_tile = max(1024, 2048 // itemsize)
    return dim if dim <= max_tile else max_tile


def scatter_forward(x: jax.Array) -> jax.Array:
    """Pallas equivalent of Scatter.forward: x.permute(0, 2, 1)."""
    B, S, H = x.shape
    itemsize = x.dtype.itemsize
    slab_bytes = S * H * itemsize
    out_shape = jax.ShapeDtypeStruct((B, H, S), x.dtype)
    cost = pl.CostEstimate(
        flops=0, transcendentals=0, bytes_accessed=2 * B * S * H * itemsize
    )

    if slab_bytes <= _SMALL_SLAB_BYTES:
        # Path A: batch-blocked.  Whole (S, H) slab per batch element stays in
        # VMEM; TB sized to reach ~4 MiB per step (capped at B).
        tb = max(1, min(B, _TARGET_TILE_BYTES // slab_bytes))
        grid = (pl.cdiv(B, tb),)
        return pl.pallas_call(
            _transpose_batched_kernel,
            out_shape=out_shape,
            grid_spec=pltpu.PrefetchScalarGridSpec(
                num_scalar_prefetch=0,
                grid=grid,
                in_specs=[pl.BlockSpec((tb, S, H), lambda b: (b, 0, 0))],
                out_specs=pl.BlockSpec((tb, H, S), lambda b: (b, 0, 0)),
            ),
            compiler_params=pltpu.CompilerParams(
                dimension_semantics=("parallel",),
                vmem_limit_bytes=48 << 20,
            ),
            cost_estimate=cost,
        )(x)

    # Path B: tile over S and H; batch is the trailing grid axis so the leading
    # parallel axis is > 1 even when B == 1 (v7x dual-TC sharding).
    ts = _pick_tile(S, itemsize)
    th = _pick_tile(H, itemsize)
    grid = (pl.cdiv(S, ts), pl.cdiv(H, th), B)
    return pl.pallas_call(
        _transpose2d_kernel,
        out_shape=out_shape,
        grid_spec=pltpu.PrefetchScalarGridSpec(
            num_scalar_prefetch=0,
            grid=grid,
            in_specs=[
                pl.BlockSpec(
                    (pl.Squeezed(), ts, th), lambda i, j, b: (b, i, j)
                ),
            ],
            out_specs=pl.BlockSpec(
                (pl.Squeezed(), th, ts), lambda i, j, b: (b, j, i)
            ),
        ),
        compiler_params=pltpu.CompilerParams(
            dimension_semantics=("parallel", "parallel", "parallel"),
            vmem_limit_bytes=48 << 20,
        ),
        cost_estimate=cost,
    )(x)


if __name__ == "__main__":
    key = jax.random.PRNGKey(0)
    k_small, k_mid, k_big = jax.random.split(key, 3)

    # Small shape consistent with the module: batch=2, seq=8, hidden=32
    # (exercises the batch-blocked Path A).
    B, S, H = 2, 8, 32
    x = jax.random.normal(k_small, (B, S, H), dtype=jnp.float32)
    y = jax.block_until_ready(scatter_forward(x))
    y_ref = jnp.transpose(x, (0, 2, 1))
    assert y.shape == (B, H, S)
    assert jnp.array_equal(y, y_ref), "mismatch vs reference transpose (small)"

    # Path B with partial edge tiles in both S and H (f32, 1024-wide tiles).
    x2 = jax.random.normal(k_mid, (1, 1152, 1280), dtype=jnp.float32)
    y2 = jax.block_until_ready(scatter_forward(x2))
    assert jnp.array_equal(
        y2, jnp.transpose(x2, (0, 2, 1))
    ), "mismatch vs reference transpose (tiled f32)"

    # Path B with bf16 (exact tile multiples).
    x3 = jax.random.normal(k_big, (1, 2048, 1024), dtype=jnp.bfloat16)
    y3 = jax.block_until_ready(scatter_forward(x3))
    assert jnp.array_equal(
        y3, jnp.transpose(x3, (0, 2, 1))
    ), "mismatch vs reference transpose (tiled bf16)"

    print("KERNEL_OK")
</pallas_src>

<mosaic_0001>
module attributes {stable_mosaic.version = 11 : i64} {
  func.func @_transpose_batched_kernel(%arg0: i32, %arg1: memref<2x8x32xf32, #tpu.memory_space<vmem>>, %arg2: memref<2x32x8xf32, #tpu.memory_space<vmem>>) attributes {dimension_semantics = [#tpu.dimension_semantics<parallel>], iteration_bounds = array<i64: 1>, scalar_prefetch = 0 : i64, scratch_operands = 0 : i64, tpu.core_type = #tpu.core_type<tc>, window_params = [{transform_indices = @transform_0, window_bounds = array<i64: 2, 8, 32>}, {transform_indices = @transform_1, window_bounds = array<i64: 2, 32, 8>}]} {
    %c0 = arith.constant 0 : index
    %c0_0 = arith.constant 0 : index
    %c0_1 = arith.constant 0 : index
    %0 = vector.load %arg1[%c0, %c0_0, %c0_1] : memref<2x8x32xf32, #tpu.memory_space<vmem>>, vector<2x8x32xf32>
    %1 = tpu.transpose %0, [0, 2, 1] : vector<2x8x32xf32> -> vector<2x32x8xf32>
    %c0_2 = arith.constant 0 : index
    %c0_3 = arith.constant 0 : index
    %c0_4 = arith.constant 0 : index
    %2 = vector.load %arg2[%c0_2, %c0_3, %c0_4] : memref<2x32x8xf32, #tpu.memory_space<vmem>>, vector<2x32x8xf32>
    tpu.vector_store %arg2[%c0_2, %c0_3, %c0_4], %1 {strides = array<i32>} : memref<2x32x8xf32, #tpu.memory_space<vmem>>, vector<2x32x8xf32>,
    return
  }
  func.func @transform_0(%arg0: i32) -> (i32, i32, i32) {
    %c0_i32 = arith.constant 0 : i32
    %c0_i32_0 = arith.constant 0 : i32
    %c0_i32_1 = arith.constant 0 : i32
    return %arg0, %c0_i32, %c0_i32_0 : i32, i32, i32
  }
  func.func @transform_1(%arg0: i32) -> (i32, i32, i32) {
    %c0_i32 = arith.constant 0 : i32
    %c0_i32_0 = arith.constant 0 : i32
    %c0_i32_1 = arith.constant 0 : i32
    return %arg0, %c0_i32, %c0_i32_0 : i32, i32, i32
  }
}

</mosaic_0001>

<bundles_post_ra>
// kernel: tpu_custom_call.1
= control target key start
LH: loop header
LB: loop body
LE: loop exit
PB: predicated region body
PF: predicated region fallthrough
CT: control target
= control target key end

     0   :  { %6 = vsyncpa [#allocation3], 0  ;;  %s134_s9 = smov [#allocation2]   ;;  %s135_s11 = smov 128   ;;  %s182_s0 = inlined_call_operand.hbm [shape: f32[2,8,32], index: 0, kind: input, shape index: {}]   ;;  %s183_s1 = inlined_call_operand.vmem [shape: f32[2,32,8], index: 1, kind: output, shape index: {}]  }
   0x1   :  { %s11_s8 = sshll.u32 %s182_s0, 4  ;;  %s13_s10 = sshll.u32 %s134_s9, 4  ;;  %s12_s8 = int_to_ptr.hbm [resolvable:$true] %s11_s8  ;;  %s14_s10 = int_to_ptr.vmem [resolvable:$true] %s13_s10 }
   0x2   :  { %s136_s12 = smov 8  }
   0x3   :  { %19 = dma.hbm_to_vmem [thread:$0]  %s12_s8, 256, %s14_s10, [#allocation3], %s135_s11, %s135_s11, %s136_s12  }
   0x4   :  { %132 = dma.done.wait [#allocation3], 256  }
   0x5   :  { %133 = vsyncadd [#allocation3], 4294967040  ;;  %v24_v0 = vld [vmem:[#allocation2] sm:$0xff]  ;;  %v25_v1 = vld [vmem:[#allocation2 + $0x8] sm:$0xff]  ;;  %vm90_vm0 = vcmask 64512  }
   0x6   :  { %26 = vxpose.xlu0.b32.start.end [1/1] (short) (narrow) %v24_v0, 32 }
  0x26   :  { %58 = vxpose.xlu0.b32.start.end [1/1] (short) (narrow) %v25_v1, 32 }
  0xaa   :  { %v42_v2 = vpop.trf.xlu0 }
  0xab   :  { %91 = vst.msk [vmem:[%s183_s1] sm:$0xff] %vm90_vm0, %v42_v2 }
  0xb2   :  { %v43_v3 = vpop.trf.xlu0 }
  0xb3   :  { %92 = vst.msk [vmem:[%s183_s1 + $0x8] sm:$0xff] %vm90_vm0, %v43_v3 }
  0xba   :  { %v44_v4 = vpop.trf.xlu0 }
  0xbb   :  { %93 = vst.msk [vmem:[%s183_s1 + $0x10] sm:$0xff] %vm90_vm0, %v44_v4 }
  0xc2   :  { %v45_v5 = vpop.trf.xlu0 }
  0xc3   :  { %94 = vst.msk [vmem:[%s183_s1 + $0x18] sm:$0xff] %vm90_vm0, %v45_v5 }
  0xca   :  { %v74_v6 = vpop.trf.xlu0 }
  0xcb   :  { %95 = vst.msk [vmem:[%s183_s1 + $0x20] sm:$0xff] %vm90_vm0, %v74_v6 }
  0xd2   :  { %v75_v7 = vpop.trf.xlu0 }
  0xd3   :  { %96 = vst.msk [vmem:[%s183_s1 + $0x28] sm:$0xff] %vm90_vm0, %v75_v7 }
  0xda   :  { %v76_v8 = vpop.trf.xlu0 }
  0xdb   :  { %97 = vst.msk [vmem:[%s183_s1 + $0x30] sm:$0xff] %vm90_vm0, %v76_v8 }
  0xe2   :  { %v77_v9 = vpop.trf.xlu0 }
  0xe3   :  { %98 = vst.msk [vmem:[%s183_s1 + $0x38] sm:$0xff] %vm90_vm0, %v77_v9 }
  0xe4   :  { %103 = vsyncpa [#allocation3], 1 }

</bundles_post_ra>
